<compile_context>
chip_gen: v7x
topology: tpu7x:2x2x1
jax: 0.10.0
libtpu: 0.0.40
codegen_flags: <defaults>
</compile_context>

<pallas_src>
import functools

import jax
import jax.numpy as jnp
from jax.experimental import pallas as pl
from jax.experimental.pallas import tpu as pltpu


def _vmem_capacity_bytes():
    """Per-core VMEM capacity; conservative 64 MiB fallback (v7x)."""
    try:
        return int(pltpu.get_tpu_info().vmem_capacity_bytes)
    except Exception:
        return 64 * 1024 * 1024


def _nll_partial_kernel(logp_ref, tgt_ref, out_ref, acc_ref):
    # logp_ref: (TILE_N, C) log-probabilities in VMEM (native dtype, bf16/f32)
    # tgt_ref : (TILE_N, 1) int32 class indices in VMEM (-1 sentinel in padding)
    # out_ref : (1, 1) f32 per-split partial sum of selected log-probs (SMEM)
    # acc_ref : (1, C) f32 lane-dense VMEM accumulator (per core / per split)
    i = pl.program_id(1)

    @pl.when(i == 0)
    def _init():
        acc_ref[...] = jnp.zeros_like(acc_ref)

    logp = logp_ref[...]                                   # (TILE_N, C)
    tgt = tgt_ref[...]                                     # (TILE_N, 1)
    tn, c = logp.shape

    # Sentinel-padded targets make a single compare sufficient: padded /
    # garbage rows have target == -1, which never matches any column.
    col = jax.lax.broadcasted_iota(jnp.int32, (tn, c), 1)
    sel = jnp.where(col == tgt, logp.astype(jnp.float32), jnp.float32(0.0))

    # Sublane (axis-0) partial reduce only; elementwise add into lane-dense acc.
    acc_ref[...] += jnp.sum(sel, axis=0, keepdims=True)    # (1, C)

    # Single cross-lane reduce + SMEM store once per split.
    @pl.when(i == pl.num_programs(1) - 1)
    def _done():
        out_ref[0, 0] = jnp.sum(acc_ref[...])


def _pick_tile_n(n, c, itemsize):
    """Row-tile size, accounting for the lane-padded (tile_n, 1) int32 target
    block (128x inflation: 512 B/row in VMEM) and for per-generation VMEM."""
    cap = _vmem_capacity_bytes()
    budget = max(4 * 1024 * 1024, cap // 8)        # ~8 MiB (v7x) / ~16 MiB (v5e/v6e)
    c_pad = max(128, ((c + 127) // 128) * 128)     # lane-padded row width
    row_bytes = c_pad * itemsize + 128 * 4         # logp row + lane-padded int32 target row
    rows = budget // row_bytes
    rows = max(8, (rows // 8) * 8)                 # sublane multiple, >= 8
    rows = min(rows, 8192)                         # cap target inflation / per-step latency
    if n <= rows:
        return n                                   # single full-extent block (always legal)
    return rows


def svi_loss(output, target, kl_value, *, nll_weight=None, reduction="mean",
             tile_n=None, num_splits=None):
    """Pallas equivalent of SVILoss.forward(output, target).

    output:   (N, C) log-probabilities (f32 or bf16, as expected by F.nll_loss)
    target:   (N,)   int class indices
    kl_value: scalar float32 (result of self.kl_div())
    """
    n, c = output.shape
    itemsize = jnp.dtype(output.dtype).itemsize

    if tile_n is None:
        tile_n = _pick_tile_n(n, c, itemsize)
    if tile_n >= n:
        tile_n = n
    else:
        tile_n = max(8, (tile_n // 8) * 8)

    tiles_total = pl.cdiv(n, tile_n)
    if num_splits is None:
        # Use both v7x TensorCores when there is more than one tile of work.
        num_splits = 2 if tiles_total >= 2 else 1
    tiles_per_split = pl.cdiv(tiles_total, num_splits)
    padded_rows = num_splits * tiles_per_split * tile_n

    # Sentinel-pad targets to the full grid extent (-1 never matches a class),
    # which also neutralizes the garbage rows of the ragged last log-prob tile
    # and any duplicate (clamped) tile reads.
    tgt = target.astype(jnp.int32)
    if padded_rows > n:
        tgt = jnp.pad(tgt, (0, padded_rows - n), constant_values=-1)
    tgt2d = tgt.reshape(padded_rows, 1)

    last_block = tiles_total - 1
    tps = tiles_per_split

    def logp_index_map(s, i):
        # Clamp so no block is fully outside the (N, C) array; the extra
        # (duplicate) read contributes nothing thanks to sentinel targets.
        return (jnp.minimum(s * tps + i, last_block), 0)

    def tgt_index_map(s, i):
        return (s * tps + i, 0)

    # Fold reduction + nll_weight into one trace-time scalar (global N!).
    if reduction == "mean":
        scale = 1.0 / float(n)
    elif reduction == "sum":
        scale = 1.0
    else:
        raise ValueError(f"unsupported reduction: {reduction}")
    if nll_weight is not None:
        scale *= float(nll_weight)

    # Accurate VMEM accounting (double-buffered logp + lane-padded target + acc).
    cap = _vmem_capacity_bytes()
    c_pad = max(128, ((c + 127) // 128) * 128)
    logp_tile_bytes = tile_n * c_pad * itemsize
    tgt_tile_bytes = pl.cdiv(tile_n, 8) * 8 * 128 * 4
    acc_bytes = 8 * c_pad * 4
    vmem_limit = 2 * logp_tile_bytes + 2 * tgt_tile_bytes + acc_bytes + 2 * 1024 * 1024
    vmem_limit = int(min(max(vmem_limit, 32 * 1024 * 1024), cap))

    cost = pl.CostEstimate(
        flops=4 * n * c,
        transcendentals=0,
        bytes_accessed=n * c * itemsize + padded_rows * 4 + num_splits * 4,
    )

    partials = pl.pallas_call(
        _nll_partial_kernel,
        out_shape=jax.ShapeDtypeStruct((num_splits, 1), jnp.float32),
        grid=(num_splits, tiles_per_split),
        in_specs=[
            pl.BlockSpec((tile_n, c), logp_index_map),   # log-prob tile (VMEM, native dtype)
            pl.BlockSpec((tile_n, 1), tgt_index_map),    # target tile (VMEM, int32)
        ],
        out_specs=pl.BlockSpec((1, 1), lambda s, i: (s, 0), memory_space=pltpu.SMEM),
        scratch_shapes=[pltpu.VMEM((1, c), jnp.float32)],   # lane-dense f32 accumulator
        compiler_params=pltpu.CompilerParams(
            dimension_semantics=("parallel", "arbitrary"),
            vmem_limit_bytes=vmem_limit,
        ),
        cost_estimate=cost,
    )(output, tgt2d)

    nll = -jnp.sum(partials) * jnp.float32(scale)
    return nll + jnp.asarray(kl_value, dtype=jnp.float32)


def make_kl_div(key, latent_dim=32):
    """Deterministic synthetic stand-in for the `kl_div` callable: analytic
    KL( N(mu, sigma^2) || N(0, 1) ) over synthetic variational parameters."""
    k_mu, k_lv = jax.random.split(key)
    mu = 0.1 * jax.random.normal(k_mu, (latent_dim,), dtype=jnp.float32)
    logvar = 0.1 * jax.random.normal(k_lv, (latent_dim,), dtype=jnp.float32)

    def kl_div():
        return 0.5 * jnp.sum(jnp.exp(logvar) + mu * mu - 1.0 - logvar)

    return kl_div


if __name__ == "__main__":
    key = jax.random.PRNGKey(0)
    k_logits, k_tgt, k_kl = jax.random.split(key, 3)

    N, C = 8, 32  # batch of 8, 32 classes
    logits = jax.random.normal(k_logits, (N, C), dtype=jnp.float32)
    log_probs = jax.nn.log_softmax(logits, axis=-1)   # nll_loss expects log-probs
    target = jax.random.randint(k_tgt, (N,), 0, C, dtype=jnp.int32)

    kl_div = make_kl_div(k_kl, latent_dim=32)
    kl_val = kl_div()

    nll_weight = 0.5
    loss = svi_loss(log_probs, target, kl_val,
                    nll_weight=nll_weight, reduction="mean")
    loss = jax.block_until_ready(loss)

    # Pure-JAX reference check (f32 path)
    ref_nll = -jnp.mean(jnp.take_along_axis(log_probs, target[:, None], axis=1))
    ref = ref_nll * nll_weight + kl_val
    assert jnp.allclose(loss, ref, rtol=1e-5, atol=1e-5), (loss, ref)

    # bf16 path: no wrapper upcast — bf16 travels to VMEM, f32 accumulation in-kernel.
    loss_bf16 = svi_loss(log_probs.astype(jnp.bfloat16), target, kl_val,
                         nll_weight=nll_weight, reduction="mean")
    loss_bf16 = jax.block_until_ready(loss_bf16)
    assert jnp.allclose(loss_bf16, ref, rtol=2e-2, atol=2e-2), (loss_bf16, ref)

    # Multi-tile, two-split path with a ragged last tile and a clamped
    # (duplicate) block: exercises the per-split VMEM accumulator, sentinel
    # padding, the (2, T) parallel grid and the (2, 1) SMEM output.
    N2 = 20
    k2a, k2b = jax.random.split(jax.random.PRNGKey(1))
    lp2 = jax.nn.log_softmax(
        jax.random.normal(k2a, (N2, C), dtype=jnp.float32), axis=-1)
    t2 = jax.random.randint(k2b, (N2,), 0, C, dtype=jnp.int32)
    loss2 = svi_loss(lp2, t2, kl_val, nll_weight=None, reduction="sum", tile_n=8)
    loss2 = jax.block_until_ready(loss2)
    ref2 = -jnp.sum(jnp.take_along_axis(lp2, t2[:, None], axis=1)) + kl_val
    assert jnp.allclose(loss2, ref2, rtol=1e-5, atol=1e-5), (loss2, ref2)

    print("KERNEL_OK")
</pallas_src>

<mosaic_0001>
module attributes {stable_mosaic.version = 11 : i64} {
  func.func @_nll_partial_kernel(%arg0: i32, %arg1: i32, %arg2: memref<8x32xf32, #tpu.memory_space<vmem>>, %arg3: memref<8x1xi32, #tpu.memory_space<vmem>>, %arg4: memref<1x1xf32, #tpu.memory_space<smem>>, %arg5: memref<1x32xf32, #tpu.memory_space<vmem>>) attributes {dimension_semantics = [#tpu.dimension_semantics<parallel>, #tpu.dimension_semantics<arbitrary>], iteration_bounds = array<i64: 1, 1>, scalar_prefetch = 0 : i64, scratch_operands = 1 : i64, tpu.core_type = #tpu.core_type<tc>, window_params = [{transform_indices = @transform_0, window_bounds = array<i64: 8, 32>}, {transform_indices = @transform_1, window_bounds = array<i64: 8, 1>}, {transform_indices = @transform_2, window_bounds = array<i64: 1, 1>}]} {
    %c0_i32 = arith.constant 0 : i32
    %0 = arith.cmpi eq, %arg1, %c0_i32 : i32
    %1 = arith.extui %0 : i1 to i32
    %c0_i32_0 = arith.constant 0 : i32
    %2 = arith.cmpi ne, %1, %c0_i32_0 : i32
    scf.if %2 {
      %cst_11 = arith.constant 0.000000e+00 : f32
      %18 = vector.broadcast %cst_11 : f32 to vector<1x32xf32>
      %c0_12 = arith.constant 0 : index
      %c0_13 = arith.constant 0 : index
      %19 = vector.load %arg5[%c0_12, %c0_13] : memref<1x32xf32, #tpu.memory_space<vmem>>, vector<1x32xf32>
      tpu.vector_store %arg5[%c0_12, %c0_13], %18 {strides = array<i32>} : memref<1x32xf32, #tpu.memory_space<vmem>>, vector<1x32xf32>,
    } else {
    }
    %c0 = arith.constant 0 : index
    %c0_1 = arith.constant 0 : index
    %3 = vector.load %arg2[%c0, %c0_1] : memref<8x32xf32, #tpu.memory_space<vmem>>, vector<8x32xf32>
    %c0_2 = arith.constant 0 : index
    %c0_3 = arith.constant 0 : index
    %4 = vector.load %arg3[%c0_2, %c0_3] : memref<8x1xi32, #tpu.memory_space<vmem>>, vector<8x1xi32>
    %5 = tpu.iota {dimensions = array<i32: 1>} : vector<8x32xi32>
    %6 = vector.broadcast %4 : vector<8x1xi32> to vector<8x32xi32>
    %7 = arith.cmpi eq, %5, %6 : vector<8x32xi32>
    %cst = arith.constant 0.000000e+00 : f32
    %8 = vector.broadcast %cst : f32 to vector<8x32xf32>
    %9 = arith.select %7, %3, %8 : vector<8x32xi1>, vector<8x32xf32>
    %c0_4 = arith.constant 0 : index
    %c0_5 = arith.constant 0 : index
    %10 = vector.load %arg5[%c0_4, %c0_5] : memref<1x32xf32, #tpu.memory_space<vmem>>, vector<1x32xf32>
    %cst_6 = arith.constant dense<0.000000e+00> : vector<32xf32>
    %11 = vector.multi_reduction <add>, %9, %cst_6 [0] : vector<8x32xf32> to vector<32xf32>
    %12 = vector.shape_cast %11 : vector<32xf32> to vector<1x32xf32>
    %13 = arith.addf %10, %12 : vector<1x32xf32>
    %c0_7 = arith.constant 0 : index
    %c0_8 = arith.constant 0 : index
    %14 = vector.load %arg5[%c0_7, %c0_8] : memref<1x32xf32, #tpu.memory_space<vmem>>, vector<1x32xf32>
    tpu.vector_store %arg5[%c0_7, %c0_8], %13 {strides = array<i32>} : memref<1x32xf32, #tpu.memory_space<vmem>>, vector<1x32xf32>,
    %c0_i32_9 = arith.constant 0 : i32
    %15 = arith.cmpi eq, %arg1, %c0_i32_9 : i32
    %16 = arith.extui %15 : i1 to i32
    %c0_i32_10 = arith.constant 0 : i32
    %17 = arith.cmpi ne, %16, %c0_i32_10 : i32
    scf.if %17 {
      %c0_11 = arith.constant 0 : index
      %c0_12 = arith.constant 0 : index
      %18 = vector.load %arg5[%c0_11, %c0_12] : memref<1x32xf32, #tpu.memory_space<vmem>>, vector<1x32xf32>
      %19 = vector.shape_cast %18 : vector<1x32xf32> to vector<1x1x32xf32>
      %cst_13 = arith.constant dense<0.000000e+00> : vector<1xf32>
      %20 = vector.multi_reduction <add>, %19, %cst_13 [1, 2] : vector<1x1x32xf32> to vector<1xf32>
      %21 = vector.shape_cast %20 : vector<1xf32> to vector<1x1x1xf32>
      %22 = vector.extract %21[0, 0, 0] : f32 from vector<1x1x1xf32>
      %c0_14 = arith.constant 0 : index
      %c0_15 = arith.constant 0 : index
      %23 = memref.load %arg4[%c0_14, %c0_15] : memref<1x1xf32, #tpu.memory_space<smem>>
      memref.store %22, %arg4[%c0_14, %c0_15] : memref<1x1xf32, #tpu.memory_space<smem>>
    } else {
    }
    return
  }
  func.func @transform_0(%arg0: i32, %arg1: i32) -> (i32, i32) {
    %c1_i32 = arith.constant 1 : i32
    %0 = arith.muli %arg0, %c1_i32 : i32
    %1 = arith.addi %0, %arg1 : i32
    %c0_i32 = arith.constant 0 : i32
    %2 = arith.minsi %1, %c0_i32 : i32
    %c0_i32_0 = arith.constant 0 : i32
    %c0_i32_1 = arith.constant 0 : i32
    return %2, %c0_i32_0 : i32, i32
  }
  func.func @transform_1(%arg0: i32, %arg1: i32) -> (i32, i32) {
    %c1_i32 = arith.constant 1 : i32
    %0 = arith.muli %arg0, %c1_i32 : i32
    %1 = arith.addi %0, %arg1 : i32
    %c0_i32 = arith.constant 0 : i32
    %c0_i32_0 = arith.constant 0 : i32
    return %1, %c0_i32 : i32, i32
  }
  func.func @transform_2(%arg0: i32, %arg1: i32) -> (i32, i32) {
    %c0_i32 = arith.constant 0 : i32
    %c0_i32_0 = arith.constant 0 : i32
    return %arg0, %c0_i32 : i32, i32
  }
}

</mosaic_0001>

<bundles_post_ra>
// kernel: tpu_custom_call.1
= control target key start
LH: loop header
LB: loop body
LE: loop exit
PB: predicated region body
PF: predicated region fallthrough
CT: control target
= control target key end

     0   :  { %s181_s0 = inlined_call_operand.vmem [shape: f32[8,32], index: 0, kind: input, shape index: {}]   ;;  %s182_s1 = inlined_call_operand.vmem [shape: s32[8,1], index: 1, kind: input, shape index: {}]   ;;  %s183_s2 = inlined_call_operand.hbm [shape: f32[1,1], index: 2, kind: output, shape index: {}]  }
   0x1   :  { %v63_v0 = vld [vmem:[%s182_s1] sm:$0xff] }
   0x2   :  { %7 = vsyncpa [#allocation4], 0  ;;  %v142_v1 = vmov 0   ;;  %vm60_vm0 = vcmask 253952   ;;  %v143_v2 = vmov 0.0   ;;  %v64_v3 = vlaneseq  ;;  %v62_v5 = vld [vmem:[%s181_s0] sm:$0xff] }
   0x3   :  { %129 = vset.pattern.permute.xlu0 %v142_v1  ;;  %61 = vst.msk [vmem:[#allocation2] sm:$0x1] %vm60_vm0, %v143_v2  ;;  %vm72_vm1 = vcmask 261120   ;;  %s130_s14 = scalar_lea.hbm %s183_s2, 16 }
   0x4   :  { %67 = vperm.xlu0 %129, %v63_v0   ;;  %v65_v4 = vand.u32 127, %v64_v3  ;;  %p131_p0 = scmp.ne.s32.totalorder %s183_s2, %s130_s14  ;;  %p134_p1 = scmp.lt.u32.totalorder %s130_s14, %s183_s2 }
   0x6   :  { %p136_p2 = pnand %p134_p1, %p131_p0 }
   0xa   :  { %v71_v14 = vld [vmem:[#allocation2] sm:$0x1] }
  0x83   :  { %v68_v6 = vpop.permute.xlu0 %67 }
  0x84   :  { %vm69_vm2 = vcmp.eq.s32.totalorder %v65_v4, %v68_v6 }
  0x85   :  { %v70_v7 = vsel %vm69_vm2, %v62_v5, 0.0 }
  0x86   :  { %v73_v8 = vsel %vm72_vm1, %v70_v7, 0.0 }
  0x87   :  { %v74_v9 = vrot.slane %v73_v8, 4 }
  0x89   :  { %v75_v10 = vadd.f32 %v74_v9, %v73_v8 }
  0x8b   :  { %v76_v11 = vrot.slane %v75_v10, 2 }
  0x8d   :  { %v77_v12 = vadd.f32 %v76_v11, %v75_v10 }
  0x8f   :  { %v78_v13 = vrot.slane %v77_v12, 1 }
  0x91   :  { %v79_v15 = vadd.f32 %v78_v13, %v77_v12 }
  0x93   :  { %v80_v16 = vadd.f32 %v79_v15, %v71_v14 }
  0x95   :  { %82 = vst.msk [vmem:[#allocation2] sm:$0x1] %vm60_vm0, %v80_v16 }
  0x9c   :  { %v86_v17 = vld [vmem:[#allocation2] sm:$0x1] }
  0x9d   :  { %v87_v18 = vsel %vm60_vm0, %v86_v17, 0.0 }
  0x9e   :  { %88 = vadd.xlane.f32.xlu0 %v87_v18 }
 0x12b   :  { %v89_v19 = vpop.xlane.xlu0 %88 }
 0x12c   :  { %v90_v20 = vrot.slane %v89_v19, 4 }
 0x12e   :  { %v91_v21 = vadd.f32 %v90_v20, %v89_v19 }
 0x130   :  { %v92_v22 = vrot.slane %v91_v21, 2 }
 0x132   :  { %v93_v23 = vadd.f32 %v92_v22, %v91_v21 }
 0x134   :  { %v94_v24 = vrot.slane %v93_v23, 1 }
 0x136   :  { %v95_v25 = vadd.f32 %v94_v24, %v93_v23 }
 0x138   :  { %124 = vpush %v95_v25 }
 0x169   :  { %s125_s0 = spop %124 }
 0x16a   :  { %98 = sst [smem:[#allocation3]] %s125_s0 }
 0x16b   :  { %139 = shalt.err (!%p136_p2)
}
 0x16c   :  { %s144_s19 = smov [#allocation3]  }
 0x16d   :  { %106 = dma.smem_to_hbm %s144_s19, 16, %s183_s2, [#allocation4]  }
 0x16e   :  { %140 = dma.done.wait [#allocation4], 16  }
 0x16f   :  { %141 = vsyncadd [#allocation4], 4294967280 }
 0x170   :  { %110 = sfence }
 0x171   :  { %111 = vsyncpa [#allocation4], 1 }

</bundles_post_ra>
